<compile_context>
chip_gen: v5e
topology: v5e:2x2
jax: 0.10.0
libtpu: 0.0.40
codegen_flags: <defaults>
</compile_context>

<pallas_src>
import jax
import jax.numpy as jnp
from jax import lax
from jax.experimental import pallas as pl
from jax.experimental.pallas import tpu as pltpu

_VMEM_LIMIT = 32 * 1024 * 1024  # fits every generation's scoped VMEM budget


def _ceil_to(n, m):
    return ((n + m - 1) // m) * m


# -----------------------------------------------------------------------------
# Phase 1 kernel: MLP embedding, tiled over the batch axis only.
# -----------------------------------------------------------------------------
def _make_mlp_kernel(n_layers):
    def kernel(*refs):
        z_ref = refs[0]
        p_refs = refs[1:1 + 2 * n_layers]
        out_ref = refs[-1]

        z = z_ref[...]                                   # [tb, in] bf16
        for li in range(n_layers):
            w = p_refs[2 * li][...]                      # bf16 [in, out]
            b = p_refs[2 * li + 1][...]                  # f32  [1, out]
            # bf16 MXU inputs, f32 accumulation; bias-add / ReLU stay f32
            # (v5e has no bf16 VPU).
            a = jnp.dot(z, w, preferred_element_type=jnp.float32) + b
            if li != n_layers - 1:
                a = jnp.maximum(a, 0.0)
            z = a.astype(jnp.bfloat16)
        out_ref[...] = z                                 # [tb, E] bf16

    return kernel


def _mlp_embed(z, params, tb, vmem_limit):
    """z: [B_p, dim] bf16 with B_p % tb == 0. Returns embeddings [B_p, E] bf16."""
    bp, dim = z.shape
    n_layers = len(params) // 2
    embed = params[-2].shape[1]
    grid = (bp // tb,)

    def resident(arr):
        # Grid-invariant weights/biases: full block + constant index map keeps
        # them VMEM-resident (no re-DMA); single-buffered so the double buffer
        # doesn't waste VMEM if hidden_dim grows.
        nd = arr.ndim
        return pl.BlockSpec(arr.shape, lambda i, _nd=nd: (0,) * _nd,
                            pipeline_mode=pl.Buffered(buffer_count=1))

    in_specs = ([pl.BlockSpec((tb, dim), lambda i: (i, 0))]
                + [resident(a) for a in params])
    out_spec = pl.BlockSpec((tb, embed), lambda i: (i, 0))

    return pl.pallas_call(
        _make_mlp_kernel(n_layers),
        out_shape=jax.ShapeDtypeStruct((bp, embed), jnp.bfloat16),
        grid=grid,
        in_specs=in_specs,
        out_specs=out_spec,
        compiler_params=pltpu.CompilerParams(
            dimension_semantics=("parallel",),
            vmem_limit_bytes=vmem_limit,
        ),
    )(z, *params)


# -----------------------------------------------------------------------------
# Phase 2 kernel: pure score matmul  scores = h(y) @ g(x).T
# -----------------------------------------------------------------------------
def _score_kernel(hy_ref, gx_ref, out_ref):
    # Contract the embed dims directly -- no explicit transpose of g(x) is
    # materialized (no XLU transpose).  bf16 MXU inputs, f32 accumulation.
    out_ref[...] = lax.dot_general(
        hy_ref[...], gx_ref[...],
        dimension_numbers=(((1,), (1,)), ((), ())),
        preferred_element_type=jnp.float32)


def _score_matmul(hy, gx, tby, tbx, vmem_limit):
    by_p, e = hy.shape
    bx_p, _ = gx.shape
    grid = (by_p // tby, bx_p // tbx)

    return pl.pallas_call(
        _score_kernel,
        out_shape=jax.ShapeDtypeStruct((by_p, bx_p), jnp.float32),
        grid=grid,
        in_specs=[pl.BlockSpec((tby, e), lambda i, j: (i, 0)),   # h(y) row tile
                  pl.BlockSpec((tbx, e), lambda i, j: (j, 0))],  # g(x) col tile
        out_specs=pl.BlockSpec((tby, tbx), lambda i, j: (i, j)),
        compiler_params=pltpu.CompilerParams(
            # Fully independent output tiles: shardable across v7x's 2 TCs.
            # (On single-TC v5e/v6e this is just a serial loop -- the large
            # lane-dense tiles are what amortize the per-step overhead there.)
            dimension_semantics=("parallel", "parallel"),
            vmem_limit_bytes=vmem_limit,
        ),
    )(hy, gx)


# -----------------------------------------------------------------------------
# Wrapper.
# -----------------------------------------------------------------------------
def _cast_params(params):
    """Weights -> bf16 (MXU inputs), biases -> f32."""
    params = list(params)
    out = []
    for w, b in zip(params[0::2], params[1::2]):
        out.append(w.astype(jnp.bfloat16))
        out.append(b.astype(jnp.float32))
    return out


def separable_critic(x, y, g_params, h_params, *, tbx=512, tby=512):
    """x: [Bx, dim], y: [By, dim] -> scores [By, Bx] (f32)."""
    bx, dim = x.shape
    by, dim_y = y.shape
    assert dim == dim_y

    # Batch tiles are multiples of 256 (fills v6e/v7x 256-wide MXU result
    # columns; already lane-dense unmasked stores), capped at the rounded-up
    # batch so small problems keep a single grid step.
    tbx = min(tbx, _ceil_to(bx, 256))
    tby = min(tby, _ceil_to(by, 256))
    bx_p = _ceil_to(bx, tbx)
    by_p = _ceil_to(by, tby)

    # bf16 activations on the host: halves x/y HBM->VMEM traffic and removes
    # the per-tile VPU cast.  Zero-padded rows produce garbage scores after the
    # bias add; they are sliced off below (mask them if this ever fuses with a
    # softmax/logsumexp over the padded matrix).
    x = x.astype(jnp.bfloat16)
    y = y.astype(jnp.bfloat16)
    if bx_p != bx:
        x = jnp.pad(x, ((0, bx_p - bx), (0, 0)))
    if by_p != by:
        y = jnp.pad(y, ((0, by_p - by), (0, 0)))

    g_p = _cast_params(g_params)
    h_p = _cast_params(h_params)

    # Phase 1: compute each embedding exactly once (hoisted out of score grid).
    gx = _mlp_embed(x, g_p, tbx, _VMEM_LIMIT)   # [Bx_p, E] bf16
    hy = _mlp_embed(y, h_p, tby, _VMEM_LIMIT)   # [By_p, E] bf16

    # Phase 2: score matmul over the 2-D parallel grid.
    scores_p = _score_matmul(hy, gx, tby, tbx, _VMEM_LIMIT)
    return scores_p[:by, :bx]


# -----------------------------------------------------------------------------
# Parameter init mirroring the torch mlp(): layers+1 Linear layers, stored as
# weight [in, out] (transposed vs torch's [out, in]) and bias [1, out].
# -----------------------------------------------------------------------------
def init_mlp_params(key, dim, hidden_dim, embed_dim, layers):
    sizes = [dim] + [hidden_dim] * layers + [embed_dim]
    n_lin = len(sizes) - 1
    keys = jax.random.split(key, 2 * n_lin)
    params = []
    for li, (fan_in, fan_out) in enumerate(zip(sizes[:-1], sizes[1:])):
        w = jax.random.normal(keys[2 * li], (fan_in, fan_out), jnp.float32)
        w = w / jnp.sqrt(jnp.float32(fan_in))
        b = 0.1 * jax.random.normal(keys[2 * li + 1], (1, fan_out), jnp.float32)
        params += [w, b]
    return tuple(params)


def reference_forward(x, y, g_params, h_params):
    """Pure-JAX (f32) reference of the PyTorch forward."""
    def mlp(z, p):
        n = len(p) // 2
        for li in range(n):
            z = z @ p[2 * li] + p[2 * li + 1]
            if li != n - 1:
                z = jnp.maximum(z, 0.0)
        return z
    return mlp(y, h_params) @ mlp(x, g_params).T


if __name__ == "__main__":
    # Shapes consistent with the forward: x, y are [batch, dim].
    dim, hidden_dim, embed_dim, layers = 16, 32, 32, 2   # layers=2 -> 3 Linear layers/MLP
    bx, by = 256, 192   # by=192 exercises the pad-to-tile path

    key = jax.random.PRNGKey(0)
    kx, ky, kg, kh = jax.random.split(key, 4)
    x = jax.random.normal(kx, (bx, dim), jnp.float32)
    y = jax.random.normal(ky, (by, dim), jnp.float32)

    g_params = init_mlp_params(kg, dim, hidden_dim, embed_dim, layers)
    h_params = init_mlp_params(kh, dim, hidden_dim, embed_dim, layers)

    scores = separable_critic(x, y, g_params, h_params)
    scores = jax.block_until_ready(scores)

    ref = reference_forward(x, y, g_params, h_params)
    assert scores.shape == (by, bx)
    # bf16 MXU inputs / bf16 intermediate embeddings (f32 accumulation) vs a
    # pure-f32 reference: loose tolerance.
    assert jnp.allclose(scores, ref, atol=5e-2, rtol=5e-2)

    print("KERNEL_OK")
</pallas_src>

<mosaic_0001>
module attributes {stable_mosaic.version = 11 : i64} {
  func.func @kernel(%arg0: i32, %arg1: memref<256x16xbf16, #tpu.memory_space<vmem>>, %arg2: memref<16x32xbf16, #tpu.memory_space<vmem>>, %arg3: memref<1x32xf32, #tpu.memory_space<vmem>>, %arg4: memref<32x32xbf16, #tpu.memory_space<vmem>>, %arg5: memref<1x32xf32, #tpu.memory_space<vmem>>, %arg6: memref<32x32xbf16, #tpu.memory_space<vmem>>, %arg7: memref<1x32xf32, #tpu.memory_space<vmem>>, %arg8: memref<256x32xbf16, #tpu.memory_space<vmem>>) attributes {dimension_semantics = [#tpu.dimension_semantics<parallel>], iteration_bounds = array<i64: 1>, scalar_prefetch = 0 : i64, scratch_operands = 0 : i64, tpu.core_type = #tpu.core_type<tc>, window_params = [{transform_indices = @transform_0, window_bounds = array<i64: 256, 16>}, {pipeline_mode = #tpu.pipeline_mode<synchronous>, transform_indices = @transform_1, window_bounds = array<i64: 16, 32>}, {pipeline_mode = #tpu.pipeline_mode<synchronous>, transform_indices = @transform_2, window_bounds = array<i64: 1, 32>}, {pipeline_mode = #tpu.pipeline_mode<synchronous>, transform_indices = @transform_3, window_bounds = array<i64: 32, 32>}, {pipeline_mode = #tpu.pipeline_mode<synchronous>, transform_indices = @transform_4, window_bounds = array<i64: 1, 32>}, {pipeline_mode = #tpu.pipeline_mode<synchronous>, transform_indices = @transform_5, window_bounds = array<i64: 32, 32>}, {pipeline_mode = #tpu.pipeline_mode<synchronous>, transform_indices = @transform_6, window_bounds = array<i64: 1, 32>}, {transform_indices = @transform_7, window_bounds = array<i64: 256, 32>}]} {
    %c0 = arith.constant 0 : index
    %c0_0 = arith.constant 0 : index
    %0 = vector.load %arg1[%c0, %c0_0] : memref<256x16xbf16, #tpu.memory_space<vmem>>, vector<256x16xbf16>
    %c0_1 = arith.constant 0 : index
    %c0_2 = arith.constant 0 : index
    %1 = vector.load %arg2[%c0_1, %c0_2] : memref<16x32xbf16, #tpu.memory_space<vmem>>, vector<16x32xbf16>
    %c0_3 = arith.constant 0 : index
    %c0_4 = arith.constant 0 : index
    %2 = vector.load %arg3[%c0_3, %c0_4] : memref<1x32xf32, #tpu.memory_space<vmem>>, vector<1x32xf32>
    %cst = arith.constant dense<0.000000e+00> : vector<256x32xf32>
    %3 = tpu.matmul %0, %1, %cst {dimension_numbers = #tpu.dot_dimension_numbers<[1], [0], [0], [1], [0, 0, 1, 1], [], []>} : vector<256x16xbf16>, vector<16x32xbf16>, vector<256x32xf32> -> vector<256x32xf32>
    %4 = vector.broadcast %2 : vector<1x32xf32> to vector<256x32xf32>
    %5 = arith.addf %3, %4 : vector<256x32xf32>
    %cst_5 = arith.constant 0.000000e+00 : f32
    %6 = vector.broadcast %cst_5 : f32 to vector<256x32xf32>
    %7 = arith.maximumf %5, %6 : vector<256x32xf32>
    %8 = arith.truncf %7 : vector<256x32xf32> to vector<256x32xbf16>
    %c0_6 = arith.constant 0 : index
    %c0_7 = arith.constant 0 : index
    %9 = vector.load %arg4[%c0_6, %c0_7] : memref<32x32xbf16, #tpu.memory_space<vmem>>, vector<32x32xbf16>
    %c0_8 = arith.constant 0 : index
    %c0_9 = arith.constant 0 : index
    %10 = vector.load %arg5[%c0_8, %c0_9] : memref<1x32xf32, #tpu.memory_space<vmem>>, vector<1x32xf32>
    %cst_10 = arith.constant dense<0.000000e+00> : vector<256x32xf32>
    %11 = tpu.matmul %8, %9, %cst_10 {dimension_numbers = #tpu.dot_dimension_numbers<[1], [0], [0], [1], [0, 0, 1, 1], [], []>} : vector<256x32xbf16>, vector<32x32xbf16>, vector<256x32xf32> -> vector<256x32xf32>
    %12 = vector.broadcast %10 : vector<1x32xf32> to vector<256x32xf32>
    %13 = arith.addf %11, %12 : vector<256x32xf32>
    %cst_11 = arith.constant 0.000000e+00 : f32
    %14 = vector.broadcast %cst_11 : f32 to vector<256x32xf32>
    %15 = arith.maximumf %13, %14 : vector<256x32xf32>
    %16 = arith.truncf %15 : vector<256x32xf32> to vector<256x32xbf16>
    %c0_12 = arith.constant 0 : index
    %c0_13 = arith.constant 0 : index
    %17 = vector.load %arg6[%c0_12, %c0_13] : memref<32x32xbf16, #tpu.memory_space<vmem>>, vector<32x32xbf16>
    %c0_14 = arith.constant 0 : index
    %c0_15 = arith.constant 0 : index
    %18 = vector.load %arg7[%c0_14, %c0_15] : memref<1x32xf32, #tpu.memory_space<vmem>>, vector<1x32xf32>
    %cst_16 = arith.constant dense<0.000000e+00> : vector<256x32xf32>
    %19 = tpu.matmul %16, %17, %cst_16 {dimension_numbers = #tpu.dot_dimension_numbers<[1], [0], [0], [1], [0, 0, 1, 1], [], []>} : vector<256x32xbf16>, vector<32x32xbf16>, vector<256x32xf32> -> vector<256x32xf32>
    %20 = vector.broadcast %18 : vector<1x32xf32> to vector<256x32xf32>
    %21 = arith.addf %19, %20 : vector<256x32xf32>
    %22 = arith.truncf %21 : vector<256x32xf32> to vector<256x32xbf16>
    %c0_17 = arith.constant 0 : index
    %c0_18 = arith.constant 0 : index
    %23 = vector.load %arg8[%c0_17, %c0_18] : memref<256x32xbf16, #tpu.memory_space<vmem>>, vector<256x32xbf16>
    tpu.vector_store %arg8[%c0_17, %c0_18], %22 {strides = array<i32>} : memref<256x32xbf16, #tpu.memory_space<vmem>>, vector<256x32xbf16>,
    return
  }
  func.func @transform_0(%arg0: i32) -> (i32, i32) {
    %c0_i32 = arith.constant 0 : i32
    %c0_i32_0 = arith.constant 0 : i32
    return %arg0, %c0_i32 : i32, i32
  }
  func.func @transform_1(%arg0: i32) -> (i32, i32) {
    %c0_i32 = arith.constant 0 : i32
    %c0_i32_0 = arith.constant 0 : i32
    %c0_i32_1 = arith.constant 0 : i32
    return %c0_i32, %c0_i32_0 : i32, i32
  }
  func.func @transform_2(%arg0: i32) -> (i32, i32) {
    %c0_i32 = arith.constant 0 : i32
    %c0_i32_0 = arith.constant 0 : i32
    %c0_i32_1 = arith.constant 0 : i32
    return %c0_i32, %c0_i32_0 : i32, i32
  }
  func.func @transform_3(%arg0: i32) -> (i32, i32) {
    %c0_i32 = arith.constant 0 : i32
    %c0_i32_0 = arith.constant 0 : i32
    %c0_i32_1 = arith.constant 0 : i32
    return %c0_i32, %c0_i32_0 : i32, i32
  }
  func.func @transform_4(%arg0: i32) -> (i32, i32) {
    %c0_i32 = arith.constant 0 : i32
    %c0_i32_0 = arith.constant 0 : i32
    %c0_i32_1 = arith.constant 0 : i32
    return %c0_i32, %c0_i32_0 : i32, i32
  }
  func.func @transform_5(%arg0: i32) -> (i32, i32) {
    %c0_i32 = arith.constant 0 : i32
    %c0_i32_0 = arith.constant 0 : i32
    %c0_i32_1 = arith.constant 0 : i32
    return %c0_i32, %c0_i32_0 : i32, i32
  }
  func.func @transform_6(%arg0: i32) -> (i32, i32) {
    %c0_i32 = arith.constant 0 : i32
    %c0_i32_0 = arith.constant 0 : i32
    %c0_i32_1 = arith.constant 0 : i32
    return %c0_i32, %c0_i32_0 : i32, i32
  }
  func.func @transform_7(%arg0: i32) -> (i32, i32) {
    %c0_i32 = arith.constant 0 : i32
    %c0_i32_0 = arith.constant 0 : i32
    return %arg0, %c0_i32 : i32, i32
  }
}

</mosaic_0001>

<bundles_post_ra>
// kernel: tpu_custom_call.1
= control target key start
LH: loop header
LB: loop body
LE: loop exit
PB: predicated region body
PF: predicated region fallthrough
CT: control target
= control target key end

     0   :  { %vm151_vm0 = vcmask 130048   ;;  %vm357_vm1 = vcmask 261120   ;;  %vm732_vm2 = vcmask 257024   ;;  %s1320_s1 = inlined_call_operand.vmem [shape: bf16[16,32], index: 1, kind: input, shape index: {}]   ;;  %s1321_s0 = inlined_call_operand.vmem [shape: bf16[256,16], index: 0, kind: input, shape index: {}]   ;;  %s1322_s2 = inlined_call_operand.vmem [shape: f32[1,32], index: 2, kind: input, shape index: {}]   ;;  %s1323_s3 = inlined_call_operand.vmem [shape: bf16[32,32], index: 3, kind: input, shape index: {}]   ;;  %s1324_s4 = inlined_call_operand.vmem [shape: f32[1,32], index: 4, kind: input, shape index: {}]   ;;  %s1325_s5 = inlined_call_operand.vmem [shape: bf16[32,32], index: 5, kind: input, shape index: {}]   ;;  %s1326_s6 = inlined_call_operand.vmem [shape: f32[1,32], index: 6, kind: input, shape index: {}]   ;;  %s1327_s7 = inlined_call_operand.vmem [shape: bf16[256,32], index: 7, kind: output, shape index: {}]  }
   0x1   :  { %v917_v0 = vld [vmem:[%s1320_s1] sm:$0xff]  ;;  %v902_v2 = vld [vmem:[%s1321_s0 + $0x8] sm:$0xff]  ;;  %v903_v3 = vld [vmem:[%s1321_s0 + $0x10] sm:$0xff] }
   0x2   :  { %v901_v1 = vld [vmem:[%s1321_s0] sm:$0xff]  ;;  %207 = vmatpush.bf16.msra.mxu0 %v917_v0  ;;  %922 = vmatpush.bf16.msra.mxu3 %v917_v0  ;;  %v904_v4 = vld [vmem:[%s1321_s0 + $0x18] sm:$0xff]  ;;  %v906_v6 = vld [vmem:[%s1321_s0 + $0x28] sm:$0xff] }
   0x3   :  { %v905_v5 = vld [vmem:[%s1321_s0 + $0x20] sm:$0xff]  ;;  %v907_v7 = vld [vmem:[%s1321_s0 + $0x30] sm:$0xff]  ;;  %v919_v8 = vld [vmem:[%s1323_s3 + $0x8] sm:$0xff] }
   0x4   :  { %412 = vmatpush.bf16.msra.mxu1 %v919_v8  ;;  %v918_v9 = vld [vmem:[%s1323_s3] sm:$0xff]  ;;  %v908_v10 = vld [vmem:[%s1321_s0 + $0x38] sm:$0xff]  ;;  %v910_v20 = vld [vmem:[%s1321_s0 + $0x48] sm:$0xff] }
   0x5   :  { %837 = vmatmul.msk.bf16.vlgmr.msra.gmra.mxu0 %vm151_vm0, %v901_v1  ;;  %v909_v11 = vld [vmem:[%s1321_s0 + $0x40] sm:$0xff]  ;;  %v911_v28 = vld [vmem:[%s1321_s0 + $0x50] sm:$0xff]  ;;  %v914_v30 = vld [vmem:[%s1321_s0 + $0x68] sm:$0xff] }
   0x6   :  { %923 = vmatpush.bf16.msrb.mxu3 %v919_v8  ;;  %v1017_v13 = vld [vmem:[%s1322_s2] ss:$0 sm:$0xff]  ;;  %v912_v37 = vld [vmem:[%s1321_s0 + $0x58] sm:$0xff]  ;;  %v915_v39 = vld [vmem:[%s1321_s0 + $0x70] sm:$0xff] }
   0x7   :  { %850 = vmatmul.msk.bf16.vlgmr.msra.gmra.mxu3 %vm151_vm0, %v914_v30  ;;  %v913_v46 = vld [vmem:[%s1321_s0 + $0x60] sm:$0xff]  ;;  %v916_v48 = vld [vmem:[%s1321_s0 + $0x78] sm:$0xff] }
   0x8   :  { %413 = vmatpush.bf16.msra.mxu1 %v918_v9 }
   0xa   :  { %924 = vmatpush.bf16.msrb.mxu3 %v918_v9 }
  0x15   :  { %838 = vmatmul.msk.bf16.gmra.mxu0 %vm151_vm0, %v902_v2 }
  0x17   :  { %851 = vmatmul.msk.bf16.gmra.mxu3 %vm151_vm0, %v915_v39 }
  0x25   :  { %839 = vmatmul.msk.bf16.gmra.mxu0 %vm151_vm0, %v903_v3 }
  0x27   :  { %852 = vmatmul.msk.bf16.gmra.mxu3 %vm151_vm0, %v916_v48 }
  0x35   :  { %840 = vmatmul.msk.bf16.gmra.mxu0 %vm151_vm0, %v904_v4 }
  0x45   :  { %841 = vmatmul.msk.bf16.gmra.mxu0 %vm151_vm0, %v905_v5 }
  0x55   :  { %842 = vmatmul.msk.bf16.gmra.mxu0 %vm151_vm0, %v906_v6  ;;  %v921_v6 = vld [vmem:[%s1325_s5 + $0x8] sm:$0xff] }
  0x56   :  { %617 = vmatpush.bf16.msra.mxu2 %v921_v6  ;;  %925 = vmatpush.bf16.msra.mxu3 %v921_v6 }
  0x65   :  { %843 = vmatmul.msk.bf16.gmra.mxu0 %vm151_vm0, %v907_v7  ;;  %v920_v7 = vld [vmem:[%s1325_s5] sm:$0xff] }
  0x66   :  { %618 = vmatpush.bf16.msra.mxu2 %v920_v7  ;;  %926 = vmatpush.bf16.msra.mxu3 %v920_v7 }
  0x75   :  { %844 = vmatmul.msk.bf16.gmra.mxu0 %vm151_vm0, %v908_v10 }
  0x82   :  { %v209_v12 = vpop.f32.mrf.mxu0 }
  0x83   :  { %v210_v14 = vadd.f32 %v1017_v13, %v209_v12 }
  0x85   :  { %845 = vmatmul.msk.bf16.gmra.mxu0 %vm151_vm0, %v909_v11  ;;  %v289_v17 = vmax.f32 %v210_v14, 0.0 }
  0x8a   :  { %v211_v15 = vpop.f32.mrf.mxu0 }
  0x8b   :  { %v212_v16 = vadd.f32 %v1017_v13, %v211_v15 }
  0x8d   :  { %v290_v18 = vmax.f32 %v212_v16, 0.0 }
  0x8f   :  { %v321_v19 = vpack.c.bf16 %v290_v18, %v289_v17 }
  0x91   :  { %861 = vmatmul.msk.bf16.vlgmr.msra.gmra.mxu1 %vm357_vm1, %v321_v19 }
  0x92   :  { %v214_v21 = vpop.f32.mrf.mxu0 }
  0x93   :  { %v215_v22 = vadd.f32 %v1017_v13, %v214_v21 }
  0x95   :  { %846 = vmatmul.msk.bf16.gmra.mxu0 %vm151_vm0, %v910_v20  ;;  %v291_v25 = vmax.f32 %v215_v22, 0.0 }
  0x9a   :  { %v216_v23 = vpop.f32.mrf.mxu0 }
  0x9b   :  { %v217_v24 = vadd.f32 %v1017_v13, %v216_v23  ;;  %v1083_v23 = vld [vmem:[%s1324_s4] ss:$0 sm:$0xff] }
  0x9d   :  { %v292_v26 = vmax.f32 %v217_v24, 0.0 }
  0x9f   :  { %v322_v27 = vpack.c.bf16 %v292_v26, %v291_v25 }
  0xa1   :  { %862 = vmatmul.msk.bf16.gmra.mxu1 %vm357_vm1, %v322_v27 }
  0xa2   :  { %v219_v29 = vpop.f32.mrf.mxu0 }
  0xa3   :  { %v220_v31 = vadd.f32 %v1017_v13, %v219_v29 }
  0xa5   :  { %847 = vmatmul.msk.bf16.gmra.mxu0 %vm151_vm0, %v911_v28  ;;  %v293_v34 = vmax.f32 %v220_v31, 0.0 }
  0xaa   :  { %v221_v32 = vpop.f32.mrf.mxu0 }
  0xab   :  { %v222_v33 = vadd.f32 %v1017_v13, %v221_v32 }
  0xad   :  { %v294_v35 = vmax.f32 %v222_v33, 0.0 }
  0xaf   :  { %v323_v36 = vpack.c.bf16 %v294_v35, %v293_v34 }
  0xb1   :  { %863 = vmatmul.msk.bf16.gmra.mxu1 %vm357_vm1, %v323_v36 }
  0xb2   :  { %v224_v38 = vpop.f32.mrf.mxu0 }
  0xb3   :  { %v225_v40 = vadd.f32 %v1017_v13, %v224_v38 }
  0xb5   :  { %848 = vmatmul.msk.bf16.gmra.mxu0 %vm151_vm0, %v912_v37  ;;  %v295_v43 = vmax.f32 %v225_v40, 0.0 }
  0xba   :  { %v226_v41 = vpop.f32.mrf.mxu0 }
  0xbb   :  { %v227_v42 = vadd.f32 %v1017_v13, %v226_v41 }
  0xbd   :  { %v296_v44 = vmax.f32 %v227_v42, 0.0 }
  0xbf   :  { %v324_v45 = vpack.c.bf16 %v296_v44, %v295_v43 }
  0xc1   :  { %864 = vmatmul.msk.bf16.gmra.mxu1 %vm357_vm1, %v324_v45 }
  0xc2   :  { %v229_v47 = vpop.f32.mrf.mxu0 }
  0xc3   :  { %v230_v49 = vadd.f32 %v1017_v13, %v229_v47 }
  0xc5   :  { %849 = vmatmul.msk.bf16.gmra.mxu0 %vm151_vm0, %v913_v46  ;;  %v297_v52 = vmax.f32 %v230_v49, 0.0 }
  0xca   :  { %v231_v50 = vpop.f32.mrf.mxu0 }
  0xcb   :  { %v232_v51 = vadd.f32 %v1017_v13, %v231_v50 }
  0xcd   :  { %v298_v53 = vmax.f32 %v232_v51, 0.0 }
  0xcf   :  { %v325_v54 = vpack.c.bf16 %v298_v53, %v297_v52 }
  0xd1   :  { %865 = vmatmul.msk.bf16.gmra.mxu1 %vm357_vm1, %v325_v54 }
  0xd2   :  { %v234_v55 = vpop.f32.mrf.mxu0 }
  0xd3   :  { %v235_v56 = vadd.f32 %v1017_v13, %v234_v55 }
  0xd5   :  { %v299_v59 = vmax.f32 %v235_v56, 0.0 }
  0xda   :  { %v236_v57 = vpop.f32.mrf.mxu0 }
  0xdb   :  { %v237_v58 = vadd.f32 %v1017_v13, %v236_v57 }
  0xdd   :  { %v300_v60 = vmax.f32 %v237_v58, 0.0 }
  0xdf   :  { %v326_v61 = vpack.c.bf16 %v300_v60, %v299_v59 }
  0xe1   :  { %866 = vmatmul.msk.bf16.gmra.mxu1 %vm357_vm1, %v326_v61 }
  0xe2   :  { %v239_v62 = vpop.f32.mrf.mxu0 }
  0xe3   :  { %v240_v63 = vadd.f32 %v1017_v13, %v239_v62 }
  0xe5   :  { %v301_v2 = vmax.f32 %v240_v63, 0.0 }
  0xea   :  { %v241_v0 = vpop.f32.mrf.mxu0 }
  0xeb   :  { %v242_v1 = vadd.f32 %v1017_v13, %v241_v0 }
  0xed   :  { %v302_v3 = vmax.f32 %v242_v1, 0.0 }
  0xef   :  { %v327_v4 = vpack.c.bf16 %v302_v3, %v301_v2  ;;  %v274_v3 = vpop.f32.mrf.mxu3 }
  0xf1   :  { %867 = vmatmul.msk.bf16.gmra.mxu1 %vm357_vm1, %v327_v4 }
  0xf2   :  { %v244_v5 = vpop.f32.mrf.mxu0 }
  0xf3   :  { %v245_v8 = vadd.f32 %v1017_v13, %v244_v5 }
  0xf5   :  { %v303_v11 = vmax.f32 %v245_v8, 0.0 }
  0xfa   :  { %v246_v9 = vpop.f32.mrf.mxu0 }
  0xfb   :  { %v247_v10 = vadd.f32 %v1017_v13, %v246_v9 }
  0xfd   :  { %v304_v12 = vmax.f32 %v247_v10, 0.0 }
  0xff   :  { %v328_v14 = vpack.c.bf16 %v304_v12, %v303_v11 }
 0x101   :  { %868 = vmatmul.msk.bf16.gmra.mxu1 %vm357_vm1, %v328_v14  ;;  %v276_v14 = vpop.f32.mrf.mxu3 }
 0x102   :  { %v249_v15 = vpop.f32.mrf.mxu0 }
 0x103   :  { %v250_v16 = vadd.f32 %v1017_v13, %v249_v15 }
 0x105   :  { %v305_v19 = vmax.f32 %v250_v16, 0.0 }
 0x10a   :  { %v251_v17 = vpop.f32.mrf.mxu0 }
 0x10b   :  { %v252_v18 = vadd.f32 %v1017_v13, %v251_v17 }
 0x10d   :  { %v306_v20 = vmax.f32 %v252_v18, 0.0 }
 0x10e   :  { %v415_v21 = vpop.f32.mrf.mxu1 }
 0x10f   :  { %v329_v22 = vpack.c.bf16 %v306_v20, %v305_v19  ;;  %v416_v25 = vadd.f32 %v1083_v23, %v415_v21  ;;  %v279_v21 = vpop.f32.mrf.mxu3 }
 0x111   :  { %869 = vmatmul.msk.bf16.gmra.mxu1 %vm357_vm1, %v329_v22  ;;  %v495_v28 = vmax.f32 %v416_v25, 0.0  ;;  %v275_v22 = vadd.f32 %v1017_v13, %v274_v3 }
 0x112   :  { %v254_v24 = vpop.f32.mrf.mxu0 }
 0x113   :  { %v255_v29 = vadd.f32 %v1017_v13, %v254_v24  ;;  %v277_v24 = vadd.f32 %v1017_v13, %v276_v14 }
 0x115   :  { %v307_v34 = vmax.f32 %v255_v29, 0.0  ;;  %v316_v29 = vmax.f32 %v277_v24, 0.0 }
 0x116   :  { %v417_v26 = vpop.f32.mrf.mxu1 }
 0x117   :  { %v418_v27 = vadd.f32 %v1083_v23, %v417_v26 }
 0x119   :  { %v496_v30 = vmax.f32 %v418_v27, 0.0 }
 0x11a   :  { %v256_v31 = vpop.f32.mrf.mxu0 }
 0x11b   :  { %v527_v32 = vpack.c.bf16 %v496_v30, %v495_v28  ;;  %v257_v33 = vadd.f32 %v1017_v13, %v256_v31  ;;  %v315_v28 = vmax.f32 %v275_v22, 0.0 }
 0x11d   :  { %v308_v35 = vmax.f32 %v257_v33, 0.0  ;;  %885 = vmatmul.msk.bf16.vlgmr.msra.gmra.mxu2 %vm357_vm1, %v527_v32  ;;  %v334_v32 = vpack.c.bf16 %v316_v29, %v315_v28  ;;  %v281_v33 = vpop.f32.mrf.mxu3 }
 0x11e   :  { %v420_v36 = vpop.f32.mrf.mxu1 }
 0x11f   :  { %v330_v37 = vpack.c.bf16 %v308_v35, %v307_v34  ;;  %v421_v39 = vadd.f32 %v1083_v23, %v420_v36  ;;  %v280_v36 = vadd.f32 %v1017_v13, %v279_v21 }
 0x121   :  { %870 = vmatmul.msk.bf16.gmra.mxu1 %vm357_vm1, %v330_v37  ;;  %v497_v42 = vmax.f32 %v421_v39, 0.0  ;;  %v282_v37 = vadd.f32 %v1017_v13, %v281_v33 }
 0x122   :  { %v259_v38 = vpop.f32.mrf.mxu0 }
 0x123   :  { %v260_v43 = vadd.f32 %v1017_v13, %v259_v38 }
 0x125   :  { %v309_v48 = vmax.f32 %v260_v43, 0.0  ;;  %v318_v43 = vmax.f32 %v282_v37, 0.0 }
 0x126   :  { %v422_v40 = vpop.f32.mrf.mxu1 }
 0x127   :  { %v423_v41 = vadd.f32 %v1083_v23, %v422_v40 }
 0x129   :  { %v498_v44 = vmax.f32 %v423_v41, 0.0  ;;  %v284_v41 = vpop.f32.mrf.mxu3 }
 0x12a   :  { %v261_v45 = vpop.f32.mrf.mxu0 }
 0x12b   :  { %v528_v46 = vpack.c.bf16 %v498_v44, %v497_v42  ;;  %v262_v47 = vadd.f32 %v1017_v13, %v261_v45  ;;  %v317_v42 = vmax.f32 %v280_v36, 0.0 }
 0x12d   :  { %v310_v49 = vmax.f32 %v262_v47, 0.0  ;;  %886 = vmatmul.msk.bf16.gmra.mxu2 %vm357_vm1, %v528_v46  ;;  %v335_v46 = vpack.c.bf16 %v318_v43, %v317_v42 }
 0x12e   :  { %v425_v50 = vpop.f32.mrf.mxu1 }
 0x12f   :  { %v331_v51 = vpack.c.bf16 %v310_v49, %v309_v48  ;;  %v426_v53 = vadd.f32 %v1083_v23, %v425_v50  ;;  %v285_v50 = vadd.f32 %v1017_v13, %v284_v41 }
 0x131   :  { %871 = vmatmul.msk.bf16.gmra.mxu1 %vm357_vm1, %v331_v51  ;;  %v499_v56 = vmax.f32 %v426_v53, 0.0  ;;  %v286_v47 = vpop.f32.mrf.mxu3 }
 0x132   :  { %v264_v52 = vpop.f32.mrf.mxu0  ;;  %v287_v51 = vadd.f32 %v1017_v13, %v286_v47 }
 0x133   :  { %v265_v57 = vadd.f32 %v1017_v13, %v264_v52 }
 0x135   :  { %v311_v62 = vmax.f32 %v265_v57, 0.0 }
 0x136   :  { %v427_v54 = vpop.f32.mrf.mxu1 }
 0x137   :  { %v428_v55 = vadd.f32 %v1083_v23, %v427_v54 }
 0x139   :  { %v500_v58 = vmax.f32 %v428_v55, 0.0  ;;  %v319_v55 = vmax.f32 %v285_v50, 0.0 }
 0x13a   :  { %v266_v59 = vpop.f32.mrf.mxu0 }
 0x13b   :  { %v529_v60 = vpack.c.bf16 %v500_v58, %v499_v56  ;;  %v267_v61 = vadd.f32 %v1017_v13, %v266_v59  ;;  %v320_v56 = vmax.f32 %v287_v51, 0.0 }
 0x13d   :  { %v312_v63 = vmax.f32 %v267_v61, 0.0  ;;  %887 = vmatmul.msk.bf16.gmra.mxu2 %vm357_vm1, %v529_v60  ;;  %v336_v59 = vpack.c.bf16 %v320_v56, %v319_v55 }
 0x13e   :  { %v430_v0 = vpop.f32.mrf.mxu1 }
 0x13f   :  { %v332_v1 = vpack.c.bf16 %v312_v63, %v311_v62  ;;  %v431_v4 = vadd.f32 %v1083_v23, %v430_v0 }
 0x141   :  { %872 = vmatmul.msk.bf16.gmra.mxu1 %vm357_vm1, %v332_v1  ;;  %v501_v7 = vmax.f32 %v431_v4, 0.0 }
 0x142   :  { %v269_v2 = vpop.f32.mrf.mxu0 }
 0x143   :  { %v270_v8 = vadd.f32 %v1017_v13, %v269_v2 }
 0x145   :  { %v313_v15 = vmax.f32 %v270_v8, 0.0  ;;  %v1137_v8 = vld [vmem:[%s1326_s6] ss:$0 sm:$0xff] }
 0x146   :  { %v432_v5 = vpop.f32.mrf.mxu1 }
 0x147   :  { %v433_v6 = vadd.f32 %v1083_v23, %v432_v5 }
 0x149   :  { %v502_v9 = vmax.f32 %v433_v6, 0.0 }
 0x14a   :  { %v271_v10 = vpop.f32.mrf.mxu0 }
 0x14b   :  { %v530_v11 = vpack.c.bf16 %v502_v9, %v501_v7  ;;  %v272_v12 = vadd.f32 %v1017_v13, %v271_v10 }
 0x14d   :  { %v314_v16 = vmax.f32 %v272_v12, 0.0  ;;  %888 = vmatmul.msk.bf16.gmra.mxu2 %vm357_vm1, %v530_v11 }
 0x14e   :  { %v435_v17 = vpop.f32.mrf.mxu1 }
 0x14f   :  { %v333_v18 = vpack.c.bf16 %v314_v16, %v313_v15  ;;  %v436_v19 = vadd.f32 %v1083_v23, %v435_v17 }
 0x151   :  { %873 = vmatmul.msk.bf16.vlgmr.msrb.gmra.mxu3 %vm357_vm1, %v333_v18  ;;  %v503_v26 = vmax.f32 %v436_v19, 0.0 }
 0x156   :  { %v437_v20 = vpop.f32.mrf.mxu1 }
 0x157   :  { %v438_v25 = vadd.f32 %v1083_v23, %v437_v20 }
 0x159   :  { %v504_v27 = vmax.f32 %v438_v25, 0.0 }
 0x15b   :  { %v531_v30 = vpack.c.bf16 %v504_v27, %v503_v26 }
 0x15d   :  { %889 = vmatmul.msk.bf16.gmra.mxu2 %vm357_vm1, %v531_v30 }
 0x15e   :  { %v440_v31 = vpop.f32.mrf.mxu1 }
 0x15f   :  { %v441_v34 = vadd.f32 %v1083_v23, %v440_v31 }
 0x161   :  { %874 = vmatmul.msk.bf16.gmra.mxu3 %vm357_vm1, %v334_v32  ;;  %v505_v39 = vmax.f32 %v441_v34, 0.0 }
 0x166   :  { %v442_v35 = vpop.f32.mrf.mxu1 }
 0x167   :  { %v443_v38 = vadd.f32 %v1083_v23, %v442_v35 }
 0x169   :  { %v506_v40 = vmax.f32 %v443_v38, 0.0 }
 0x16b   :  { %v532_v44 = vpack.c.bf16 %v506_v40, %v505_v39 }
 0x16d   :  { %890 = vmatmul.msk.bf16.gmra.mxu2 %vm357_vm1, %v532_v44 }
 0x16e   :  { %v445_v45 = vpop.f32.mrf.mxu1 }
 0x16f   :  { %v446_v48 = vadd.f32 %v1083_v23, %v445_v45 }
 0x171   :  { %875 = vmatmul.msk.bf16.gmra.mxu3 %vm357_vm1, %v335_v46  ;;  %v507_v53 = vmax.f32 %v446_v48, 0.0 }
 0x176   :  { %v447_v49 = vpop.f32.mrf.mxu1 }
 0x177   :  { %v448_v52 = vadd.f32 %v1083_v23, %v447_v49 }
 0x179   :  { %v508_v54 = vmax.f32 %v448_v52, 0.0 }
 0x17b   :  { %v533_v57 = vpack.c.bf16 %v508_v54, %v507_v53 }
 0x17d   :  { %891 = vmatmul.msk.bf16.gmra.mxu2 %vm357_vm1, %v533_v57 }
 0x17e   :  { %v450_v58 = vpop.f32.mrf.mxu1 }
 0x17f   :  { %v451_v60 = vadd.f32 %v1083_v23, %v450_v58 }
 0x181   :  { %876 = vmatmul.msk.bf16.gmra.mxu3 %vm357_vm1, %v336_v59  ;;  %v509_v63 = vmax.f32 %v451_v60, 0.0 }
 0x186   :  { %v452_v61 = vpop.f32.mrf.mxu1 }
 0x187   :  { %v453_v62 = vadd.f32 %v1083_v23, %v452_v61 }
 0x189   :  { %v510_v13 = vmax.f32 %v453_v62, 0.0 }
 0x18b   :  { %v534_v0 = vpack.c.bf16 %v510_v13, %v509_v63 }
 0x18d   :  { %892 = vmatmul.msk.bf16.gmra.mxu2 %vm357_vm1, %v534_v0 }
 0x18e   :  { %v455_v1 = vpop.f32.mrf.mxu1 }
 0x18f   :  { %v456_v2 = vadd.f32 %v1083_v23, %v455_v1 }
 0x191   :  { %v511_v5 = vmax.f32 %v456_v2, 0.0 }
 0x196   :  { %v457_v3 = vpop.f32.mrf.mxu1 }
 0x197   :  { %v458_v4 = vadd.f32 %v1083_v23, %v457_v3 }
 0x199   :  { %v512_v6 = vmax.f32 %v458_v4, 0.0 }
 0x19b   :  { %v535_v7 = vpack.c.bf16 %v512_v6, %v511_v5 }
 0x19d   :  { %893 = vmatmul.msk.bf16.gmra.mxu2 %vm357_vm1, %v535_v7 }
 0x19e   :  { %v460_v9 = vpop.f32.mrf.mxu1 }
 0x19f   :  { %v461_v14 = vadd.f32 %v1083_v23, %v460_v9 }
 0x1a0   :  { %v620_v10 = vpop.f32.mrf.mxu2 }
 0x1a1   :  { %v621_v11 = vadd.f32 %v1137_v8, %v620_v10  ;;  %v513_v18 = vmax.f32 %v461_v14, 0.0 }
 0x1a3   :  { %v700_v12 = vpack.c.bf16 %v621_v11, %v621_v11 }
 0x1a5   :  { %733 = vst.msk [vmem:[%s1327_s7] sm:$0xf] %vm732_vm2, %v700_v12 }
 0x1a6   :  { %v462_v15 = vpop.f32.mrf.mxu1 }
 0x1a7   :  { %v463_v16 = vadd.f32 %v1083_v23, %v462_v15 }
 0x1a8   :  { %v622_v17 = vpop.f32.mrf.mxu2 }
 0x1a9   :  { %v514_v19 = vmax.f32 %v463_v16, 0.0  ;;  %v623_v20 = vadd.f32 %v1137_v8, %v622_v17 }
 0x1ab   :  { %v536_v21 = vpack.c.bf16 %v514_v19, %v513_v18  ;;  %v701_v22 = vpack.c.bf16 %v623_v20, %v623_v20 }
 0x1ad   :  { %734 = vst.msk [vmem:[%s1327_s7 + $0x4] sm:$0xf] %vm732_vm2, %v701_v22  ;;  %894 = vmatmul.msk.bf16.gmra.mxu2 %vm357_vm1, %v536_v21 }
 0x1ae   :  { %v465_v24 = vpop.f32.mrf.mxu1 }
 0x1af   :  { %v466_v28 = vadd.f32 %v1083_v23, %v465_v24 }
 0x1b0   :  { %v625_v25 = vpop.f32.mrf.mxu2 }
 0x1b1   :  { %v626_v26 = vadd.f32 %v1137_v8, %v625_v25  ;;  %v515_v32 = vmax.f32 %v466_v28, 0.0 }
 0x1b3   :  { %v702_v27 = vpack.c.bf16 %v626_v26, %v626_v26 }
 0x1b5   :  { %735 = vst.msk [vmem:[%s1327_s7 + $0x8] sm:$0xf] %vm732_vm2, %v702_v27 }
 0x1b6   :  { %v467_v29 = vpop.f32.mrf.mxu1 }
 0x1b7   :  { %v468_v30 = vadd.f32 %v1083_v23, %v467_v29 }
 0x1b8   :  { %v627_v31 = vpop.f32.mrf.mxu2 }
 0x1b9   :  { %v516_v33 = vmax.f32 %v468_v30, 0.0  ;;  %v628_v34 = vadd.f32 %v1137_v8, %v627_v31 }
 0x1bb   :  { %v537_v35 = vpack.c.bf16 %v516_v33, %v515_v32  ;;  %v703_v36 = vpack.c.bf16 %v628_v34, %v628_v34 }
 0x1bd   :  { %736 = vst.msk [vmem:[%s1327_s7 + $0xc] sm:$0xf] %vm732_vm2, %v703_v36  ;;  %895 = vmatmul.msk.bf16.gmra.mxu2 %vm357_vm1, %v537_v35 }
 0x1be   :  { %v470_v37 = vpop.f32.mrf.mxu1 }
 0x1bf   :  { %v471_v41 = vadd.f32 %v1083_v23, %v470_v37 }
 0x1c0   :  { %v630_v38 = vpop.f32.mrf.mxu2 }
 0x1c1   :  { %v631_v39 = vadd.f32 %v1137_v8, %v630_v38  ;;  %v517_v45 = vmax.f32 %v471_v41, 0.0 }
 0x1c3   :  { %v704_v40 = vpack.c.bf16 %v631_v39, %v631_v39 }
 0x1c5   :  { %737 = vst.msk [vmem:[%s1327_s7 + $0x10] sm:$0xf] %vm732_vm2, %v704_v40 }
 0x1c6   :  { %v472_v42 = vpop.f32.mrf.mxu1 }
 0x1c7   :  { %v473_v43 = vadd.f32 %v1083_v23, %v472_v42 }
 0x1c8   :  { %v632_v44 = vpop.f32.mrf.mxu2 }
 0x1c9   :  { %v518_v46 = vmax.f32 %v473_v43, 0.0  ;;  %v633_v47 = vadd.f32 %v1137_v8, %v632_v44 }
 0x1cb   :  { %v538_v48 = vpack.c.bf16 %v518_v46, %v517_v45  ;;  %v705_v49 = vpack.c.bf16 %v633_v47, %v633_v47 }
 0x1cd   :  { %738 = vst.msk [vmem:[%s1327_s7 + $0x14] sm:$0xf] %vm732_vm2, %v705_v49  ;;  %896 = vmatmul.msk.bf16.gmra.mxu2 %vm357_vm1, %v538_v48 }
 0x1d0   :  { %v635_v50 = vpop.f32.mrf.mxu2 }
 0x1d1   :  { %v636_v51 = vadd.f32 %v1137_v8, %v635_v50 }
 0x1d3   :  { %v706_v52 = vpack.c.bf16 %v636_v51, %v636_v51 }
 0x1d4   :  { %v475_v53 = vpop.f32.mrf.mxu3 }
 0x1d5   :  { %739 = vst.msk [vmem:[%s1327_s7 + $0x18] sm:$0xf] %vm732_vm2, %v706_v52  ;;  %v476_v56 = vadd.f32 %v1083_v23, %v475_v53 }
 0x1d7   :  { %v519_v60 = vmax.f32 %v476_v56, 0.0 }
 0x1d8   :  { %v637_v54 = vpop.f32.mrf.mxu2 }
 0x1d9   :  { %v638_v55 = vadd.f32 %v1137_v8, %v637_v54 }
 0x1db   :  { %v707_v57 = vpack.c.bf16 %v638_v55, %v638_v55 }
 0x1dc   :  { %v477_v58 = vpop.f32.mrf.mxu3 }
 0x1dd   :  { %740 = vst.msk [vmem:[%s1327_s7 + $0x1c] sm:$0xf] %vm732_vm2, %v707_v57  ;;  %v478_v59 = vadd.f32 %v1083_v23, %v477_v58 }
 0x1df   :  { %v520_v61 = vmax.f32 %v478_v59, 0.0 }
 0x1e0   :  { %v640_v62 = vpop.f32.mrf.mxu2 }
 0x1e1   :  { %v539_v63 = vpack.c.bf16 %v520_v61, %v519_v60  ;;  %v641_v13 = vadd.f32 %v1137_v8, %v640_v62 }
 0x1e3   :  { %v708_v0 = vpack.c.bf16 %v641_v13, %v641_v13  ;;  %897 = vmatmul.msk.bf16.vlgmr.msra.gmra.mxu3 %vm357_vm1, %v539_v63 }
 0x1e4   :  { %v480_v1 = vpop.f32.mrf.mxu3 }
 0x1e5   :  { %741 = vst.msk [vmem:[%s1327_s7 + $0x20] sm:$0xf] %vm732_vm2, %v708_v0  ;;  %v481_v4 = vadd.f32 %v1083_v23, %v480_v1 }
 0x1e7   :  { %v521_v9 = vmax.f32 %v481_v4, 0.0 }
 0x1e8   :  { %v642_v2 = vpop.f32.mrf.mxu2 }
 0x1e9   :  { %v643_v3 = vadd.f32 %v1137_v8, %v642_v2 }
 0x1eb   :  { %v709_v5 = vpack.c.bf16 %v643_v3, %v643_v3 }
 0x1ec   :  { %v482_v6 = vpop.f32.mrf.mxu3 }
 0x1ed   :  { %742 = vst.msk [vmem:[%s1327_s7 + $0x24] sm:$0xf] %vm732_vm2, %v709_v5  ;;  %v483_v7 = vadd.f32 %v1083_v23, %v482_v6 }
 0x1ef   :  { %v522_v10 = vmax.f32 %v483_v7, 0.0 }
 0x1f0   :  { %v645_v11 = vpop.f32.mrf.mxu2 }
 0x1f1   :  { %v540_v12 = vpack.c.bf16 %v522_v10, %v521_v9  ;;  %v646_v14 = vadd.f32 %v1137_v8, %v645_v11 }
 0x1f3   :  { %v710_v15 = vpack.c.bf16 %v646_v14, %v646_v14  ;;  %898 = vmatmul.msk.bf16.gmra.mxu3 %vm357_vm1, %v540_v12 }
 0x1f4   :  { %v485_v16 = vpop.f32.mrf.mxu3 }
 0x1f5   :  { %743 = vst.msk [vmem:[%s1327_s7 + $0x28] sm:$0xf] %vm732_vm2, %v710_v15  ;;  %v486_v19 = vadd.f32 %v1083_v23, %v485_v16 }
 0x1f7   :  { %v523_v24 = vmax.f32 %v486_v19, 0.0 }
 0x1f8   :  { %v647_v17 = vpop.f32.mrf.mxu2 }
 0x1f9   :  { %v648_v18 = vadd.f32 %v1137_v8, %v647_v17 }
 0x1fb   :  { %v711_v20 = vpack.c.bf16 %v648_v18, %v648_v18 }
 0x1fc   :  { %v487_v21 = vpop.f32.mrf.mxu3 }
 0x1fd   :  { %744 = vst.msk [vmem:[%s1327_s7 + $0x2c] sm:$0xf] %vm732_vm2, %v711_v20  ;;  %v488_v22 = vadd.f32 %v1083_v23, %v487_v21 }
 0x1ff   :  { %v524_v25 = vmax.f32 %v488_v22, 0.0 }
 0x200   :  { %v650_v26 = vpop.f32.mrf.mxu2 }
 0x201   :  { %v541_v27 = vpack.c.bf16 %v524_v25, %v523_v24  ;;  %v651_v28 = vadd.f32 %v1137_v8, %v650_v26 }
 0x203   :  { %v712_v29 = vpack.c.bf16 %v651_v28, %v651_v28  ;;  %899 = vmatmul.msk.bf16.gmra.mxu3 %vm357_vm1, %v541_v27 }
 0x204   :  { %v490_v30 = vpop.f32.mrf.mxu3 }
 0x205   :  { %745 = vst.msk [vmem:[%s1327_s7 + $0x30] sm:$0xf] %vm732_vm2, %v712_v29  ;;  %v491_v33 = vadd.f32 %v1083_v23, %v490_v30 }
 0x207   :  { %v525_v37 = vmax.f32 %v491_v33, 0.0 }
 0x208   :  { %v652_v31 = vpop.f32.mrf.mxu2 }
 0x209   :  { %v653_v32 = vadd.f32 %v1137_v8, %v652_v31 }
 0x20b   :  { %v713_v34 = vpack.c.bf16 %v653_v32, %v653_v32 }
 0x20c   :  { %v492_v35 = vpop.f32.mrf.mxu3 }
 0x20d   :  { %746 = vst.msk [vmem:[%s1327_s7 + $0x34] sm:$0xf] %vm732_vm2, %v713_v34  ;;  %v493_v36 = vadd.f32 %v1083_v23, %v492_v35 }
 0x20f   :  { %v526_v38 = vmax.f32 %v493_v36, 0.0 }
 0x210   :  { %v655_v39 = vpop.f32.mrf.mxu2 }
 0x211   :  { %v542_v40 = vpack.c.bf16 %v526_v38, %v525_v37  ;;  %v656_v41 = vadd.f32 %v1137_v8, %v655_v39 }
 0x213   :  { %v714_v42 = vpack.c.bf16 %v656_v41, %v656_v41  ;;  %900 = vmatmul.msk.bf16.gmra.mxu3 %vm357_vm1, %v542_v40 }
 0x215   :  { %747 = vst.msk [vmem:[%s1327_s7 + $0x38] sm:$0xf] %vm732_vm2, %v714_v42 }
 0x218   :  { %v657_v43 = vpop.f32.mrf.mxu2 }
 0x219   :  { %v658_v44 = vadd.f32 %v1137_v8, %v657_v43 }
 0x21b   :  { %v715_v45 = vpack.c.bf16 %v658_v44, %v658_v44 }
 0x21d   :  { %748 = vst.msk [vmem:[%s1327_s7 + $0x3c] sm:$0xf] %vm732_vm2, %v715_v45 }
 0x220   :  { %v660_v23 = vpop.f32.mrf.mxu2 }
 0x221   :  { %v661_v46 = vadd.f32 %v1137_v8, %v660_v23 }
 0x223   :  { %v716_v47 = vpack.c.bf16 %v661_v46, %v661_v46 }
 0x225   :  { %749 = vst.msk [vmem:[%s1327_s7 + $0x40] sm:$0xf] %vm732_vm2, %v716_v47 }
 0x228   :  { %v662_v48 = vpop.f32.mrf.mxu2 }
 0x229   :  { %v663_v49 = vadd.f32 %v1137_v8, %v662_v48 }
 0x22b   :  { %v717_v50 = vpack.c.bf16 %v663_v49, %v663_v49 }
 0x22d   :  { %750 = vst.msk [vmem:[%s1327_s7 + $0x44] sm:$0xf] %vm732_vm2, %v717_v50 }
 0x230   :  { %v665_v51 = vpop.f32.mrf.mxu2 }
 0x231   :  { %v666_v52 = vadd.f32 %v1137_v8, %v665_v51 }
 0x233   :  { %v718_v53 = vpack.c.bf16 %v666_v52, %v666_v52 }
 0x235   :  { %751 = vst.msk [vmem:[%s1327_s7 + $0x48] sm:$0xf] %vm732_vm2, %v718_v53 }
 0x238   :  { %v667_v54 = vpop.f32.mrf.mxu2 }
 0x239   :  { %v668_v55 = vadd.f32 %v1137_v8, %v667_v54 }
 0x23b   :  { %v719_v56 = vpack.c.bf16 %v668_v55, %v668_v55 }
 0x23d   :  { %752 = vst.msk [vmem:[%s1327_s7 + $0x4c] sm:$0xf] %vm732_vm2, %v719_v56 }
 0x240   :  { %v670_v57 = vpop.f32.mrf.mxu2 }
 0x241   :  { %v671_v58 = vadd.f32 %v1137_v8, %v670_v57 }
 0x243   :  { %v720_v59 = vpack.c.bf16 %v671_v58, %v671_v58 }
 0x245   :  { %753 = vst.msk [vmem:[%s1327_s7 + $0x50] sm:$0xf] %vm732_vm2, %v720_v59 }
 0x248   :  { %v672_v60 = vpop.f32.mrf.mxu2 }
 0x249   :  { %v673_v61 = vadd.f32 %v1137_v8, %v672_v60 }
 0x24b   :  { %v721_v62 = vpack.c.bf16 %v673_v61, %v673_v61 }
 0x24d   :  { %754 = vst.msk [vmem:[%s1327_s7 + $0x54] sm:$0xf] %vm732_vm2, %v721_v62 }
 0x250   :  { %v675_v63 = vpop.f32.mrf.mxu2 }
 0x251   :  { %v676_v13 = vadd.f32 %v1137_v8, %v675_v63 }
 0x253   :  { %v722_v0 = vpack.c.bf16 %v676_v13, %v676_v13 }
 0x255   :  { %755 = vst.msk [vmem:[%s1327_s7 + $0x58] sm:$0xf] %vm732_vm2, %v722_v0 }
 0x258   :  { %v677_v1 = vpop.f32.mrf.mxu2 }
 0x259   :  { %v678_v2 = vadd.f32 %v1137_v8, %v677_v1 }
 0x25b   :  { %v723_v3 = vpack.c.bf16 %v678_v2, %v678_v2 }
 0x25d   :  { %756 = vst.msk [vmem:[%s1327_s7 + $0x5c] sm:$0xf] %vm732_vm2, %v723_v3 }
 0x266   :  { %v680_v4 = vpop.f32.mrf.mxu3 }
 0x267   :  { %v681_v5 = vadd.f32 %v1137_v8, %v680_v4 }
 0x269   :  { %v724_v6 = vpack.c.bf16 %v681_v5, %v681_v5 }
 0x26b   :  { %757 = vst.msk [vmem:[%s1327_s7 + $0x60] sm:$0xf] %vm732_vm2, %v724_v6 }
 0x26e   :  { %v682_v7 = vpop.f32.mrf.mxu3 }
 0x26f   :  { %v683_v9 = vadd.f32 %v1137_v8, %v682_v7 }
 0x271   :  { %v725_v10 = vpack.c.bf16 %v683_v9, %v683_v9 }
 0x273   :  { %758 = vst.msk [vmem:[%s1327_s7 + $0x64] sm:$0xf] %vm732_vm2, %v725_v10 }
 0x276   :  { %v685_v11 = vpop.f32.mrf.mxu3 }
 0x277   :  { %v686_v12 = vadd.f32 %v1137_v8, %v685_v11 }
 0x279   :  { %v726_v14 = vpack.c.bf16 %v686_v12, %v686_v12 }
 0x27b   :  { %759 = vst.msk [vmem:[%s1327_s7 + $0x68] sm:$0xf] %vm732_vm2, %v726_v14 }
 0x27e   :  { %v687_v15 = vpop.f32.mrf.mxu3 }
 0x27f   :  { %v688_v16 = vadd.f32 %v1137_v8, %v687_v15 }
 0x281   :  { %v727_v17 = vpack.c.bf16 %v688_v16, %v688_v16 }
 0x283   :  { %760 = vst.msk [vmem:[%s1327_s7 + $0x6c] sm:$0xf] %vm732_vm2, %v727_v17 }
 0x286   :  { %v690_v18 = vpop.f32.mrf.mxu3 }
 0x287   :  { %v691_v19 = vadd.f32 %v1137_v8, %v690_v18 }
 0x289   :  { %v728_v20 = vpack.c.bf16 %v691_v19, %v691_v19 }
 0x28b   :  { %761 = vst.msk [vmem:[%s1327_s7 + $0x70] sm:$0xf] %vm732_vm2, %v728_v20 }
 0x28e   :  { %v692_v21 = vpop.f32.mrf.mxu3 }
 0x28f   :  { %v693_v22 = vadd.f32 %v1137_v8, %v692_v21 }
 0x291   :  { %v729_v24 = vpack.c.bf16 %v693_v22, %v693_v22 }
 0x293   :  { %762 = vst.msk [vmem:[%s1327_s7 + $0x74] sm:$0xf] %vm732_vm2, %v729_v24 }
 0x296   :  { %v695_v25 = vpop.f32.mrf.mxu3 }
 0x297   :  { %v696_v26 = vadd.f32 %v1137_v8, %v695_v25 }
 0x299   :  { %v730_v27 = vpack.c.bf16 %v696_v26, %v696_v26 }
 0x29b   :  { %763 = vst.msk [vmem:[%s1327_s7 + $0x78] sm:$0xf] %vm732_vm2, %v730_v27 }
 0x29e   :  { %v697_v28 = vpop.f32.mrf.mxu3 }
 0x29f   :  { %v698_v29 = vadd.f32 %v1137_v8, %v697_v28 }
 0x2a1   :  { %v731_v30 = vpack.c.bf16 %v698_v29, %v698_v29 }
 0x2a3   :  { %764 = vst.msk [vmem:[%s1327_s7 + $0x7c] sm:$0xf] %vm732_vm2, %v731_v30 }

</bundles_post_ra>
